<compile_context>
chip_gen: v5e
topology: v5e:2x2
jax: 0.10.0
libtpu: 0.0.40
codegen_flags: <defaults>
</compile_context>

<pallas_src>
import jax
import jax.numpy as jnp
from jax import lax
from jax.experimental import pallas as pl
from jax.experimental.pallas import tpu as pltpu


def _make_ce_sum_kernel(rows, tb):
    """Build a kernel that sums CE over one (tb, C) row tile per grid step."""

    def kernel(tgt_ref, logits_ref, out_ref):
        logits = logits_ref[...].astype(jnp.float32)          # (tb, C) f32
        tgt = tgt_ref[...]                                     # (tb, 1) int32
        n, c = logits.shape

        # Numerically stable CE:  log(sum(exp(shifted))) - shifted[target]
        row_max = jnp.max(logits, axis=-1, keepdims=True)                  # (tb, 1)
        shifted = logits - row_max                                         # (tb, C)
        lse = jnp.log(jnp.sum(jnp.exp(shifted), axis=-1, keepdims=True))   # (tb, 1)

        class_ids = lax.broadcasted_iota(jnp.int32, (n, c), 1)
        picked = jnp.sum(jnp.where(class_ids == tgt, shifted, 0.0),
                         axis=-1, keepdims=True)                           # (tb, 1)
        loss_row = lse - picked

        # Ragged-tail mask: rows past the true extent read garbage; a select (not a
        # multiply) guarantees NaN/Inf from those rows never reaches the sum.
        row_ids = pl.program_id(0) * tb + lax.broadcasted_iota(jnp.int32, (n, 1), 0)
        loss_row = jnp.where(row_ids < rows, loss_row, 0.0)

        partial = jnp.sum(loss_row)
        # (1, 8, 128) sublane/lane-aligned per-tile partial (unmasked store).
        out_ref[...] = jnp.full(out_ref.shape, partial, dtype=jnp.float32)

    return kernel


def _vmem_capacity_bytes():
    try:
        return int(pltpu.get_tpu_info().vmem_capacity_bytes)
    except Exception:
        return 64 * 1024 * 1024   # conservative: v7x per-TensorCore VMEM


def _ce_sum(logits, tgts):
    """Sum over rows of CrossEntropy(logits[r], tgts[r]) as an f32 scalar."""
    rows, C = logits.shape
    tgts = tgts.astype(jnp.int32).reshape(rows, 1)

    itemsize = logits.dtype.itemsize
    vmem_cap = _vmem_capacity_bytes()
    vmem_limit = min((vmem_cap * 3) // 4, 96 * 1024 * 1024)  # 96 MiB v5e/v6e, 48 MiB v7x
    budget = vmem_limit // 2   # headroom for compiler scratch / output buffers

    # Per-row VMEM bytes: double-buffered native-dtype logits tile,
    # double-buffered lane-padded (tb, 1) int32 target column (512 B/row/buffer),
    # plus ~3 live f32 (tb, C) intermediates.
    # TODO(synk): make the target column lane-dense for very narrow C workloads.
    per_row = 2 * C * itemsize + 2 * 128 * 4 + 3 * C * 4
    tb = max(8, budget // per_row)

    if tb >= rows:
        tb = rows                      # one block == full array extent (any shape ok)
    else:
        tb = max(8, (tb // 8) * 8)     # sublane-aligned tile; ragged tail masked in-kernel
    num_tiles = pl.cdiv(rows, tb)
    # TODO(synk): for very wide C (a (tb, C) block no longer fits VMEM) switch to an
    # online logsumexp over a C-tiled "arbitrary" reduction grid axis.

    partials = pl.pallas_call(
        _make_ce_sum_kernel(rows, tb),
        out_shape=jax.ShapeDtypeStruct((num_tiles, 8, 128), jnp.float32),
        grid_spec=pltpu.PrefetchScalarGridSpec(
            num_scalar_prefetch=0,
            grid=(num_tiles,),
            in_specs=[
                pl.BlockSpec((tb, 1), lambda r: (r, 0)),       # targets (int32)
                pl.BlockSpec((tb, C), lambda r: (r, 0)),       # logits (native dtype)
            ],
            out_specs=pl.BlockSpec((1, 8, 128), lambda r: (r, 0, 0)),
        ),
        compiler_params=pltpu.CompilerParams(
            dimension_semantics=("parallel",),                 # tiles split across TCs
            vmem_limit_bytes=vmem_limit,
        ),
    )(tgts, logits)

    return jnp.sum(partials[:, 0, 0])


def multi_task_loss(outputs, targets):
    """sum_i mean_b CrossEntropy(outputs[i], targets[i]) — matches the torch module."""
    total = jnp.float32(0.0)
    for o, t in zip(outputs, targets):
        b = o.shape[0]
        total = total + _ce_sum(o, t) / jnp.float32(b)
    return total


def _reference(outputs, targets):
    total = jnp.float32(0.0)
    for o, t in zip(outputs, targets):
        o = o.astype(jnp.float32)
        logz = jax.scipy.special.logsumexp(o, axis=-1)
        picked = jnp.take_along_axis(o, t[:, None].astype(jnp.int32), axis=-1)[:, 0]
        total = total + jnp.mean(logz - picked)
    return total


if __name__ == "__main__":
    key = jax.random.PRNGKey(0)

    # Main check: 3 tasks, B=8, C=16 (8-aligned row-tile path).
    num_tasks, B, C = 3, 8, 16
    outputs, targets = [], []
    for _ in range(num_tasks):
        key, k1, k2 = jax.random.split(key, 3)
        outputs.append(jax.random.normal(k1, (B, C), dtype=jnp.float32))
        targets.append(jax.random.randint(k2, (B,), 0, C, dtype=jnp.int32))
    loss = multi_task_loss(outputs, targets)
    jax.block_until_ready(loss)
    ref = _reference(outputs, targets)
    assert jnp.allclose(loss, ref, rtol=1e-5, atol=1e-5), (loss, ref)

    # Secondary check: odd row/class counts (single full-extent block path).
    num_tasks2, B2, C2 = 2, 10, 20
    outputs2, targets2 = [], []
    for _ in range(num_tasks2):
        key, k1, k2 = jax.random.split(key, 3)
        outputs2.append(jax.random.normal(k1, (B2, C2), dtype=jnp.float32))
        targets2.append(jax.random.randint(k2, (B2,), 0, C2, dtype=jnp.int32))
    loss2 = multi_task_loss(outputs2, targets2)
    jax.block_until_ready(loss2)
    ref2 = _reference(outputs2, targets2)
    assert jnp.allclose(loss2, ref2, rtol=1e-5, atol=1e-5), (loss2, ref2)

    print("KERNEL_OK")
</pallas_src>

<mosaic_0001>
module attributes {stable_mosaic.version = 11 : i64} {
  func.func @kernel(%arg0: i32, %arg1: memref<8x1xi32, #tpu.memory_space<vmem>>, %arg2: memref<8x16xf32, #tpu.memory_space<vmem>>, %arg3: memref<1x8x128xf32, #tpu.memory_space<vmem>>) attributes {dimension_semantics = [#tpu.dimension_semantics<parallel>], iteration_bounds = array<i64: 1>, scalar_prefetch = 0 : i64, scratch_operands = 0 : i64, tpu.core_type = #tpu.core_type<tc>, window_params = [{transform_indices = @transform_0, window_bounds = array<i64: 8, 1>}, {transform_indices = @transform_1, window_bounds = array<i64: 8, 16>}, {transform_indices = @transform_2, window_bounds = array<i64: 1, 8, 128>}]} {
    %c0 = arith.constant 0 : index
    %c0_0 = arith.constant 0 : index
    %0 = vector.load %arg2[%c0, %c0_0] : memref<8x16xf32, #tpu.memory_space<vmem>>, vector<8x16xf32>
    %c0_1 = arith.constant 0 : index
    %c0_2 = arith.constant 0 : index
    %1 = vector.load %arg1[%c0_1, %c0_2] : memref<8x1xi32, #tpu.memory_space<vmem>>, vector<8x1xi32>
    %cst = arith.constant dense<0xFF800000> : vector<8xf32>
    %2 = vector.multi_reduction <maximumf>, %0, %cst [1] : vector<8x16xf32> to vector<8xf32>
    %3 = vector.shape_cast %2 : vector<8xf32> to vector<8x1xf32>
    %4 = vector.broadcast %3 : vector<8x1xf32> to vector<8x16xf32>
    %5 = arith.subf %0, %4 : vector<8x16xf32>
    %6 = math.exp %5 : vector<8x16xf32>
    %cst_3 = arith.constant dense<0.000000e+00> : vector<8xf32>
    %7 = vector.multi_reduction <add>, %6, %cst_3 [1] : vector<8x16xf32> to vector<8xf32>
    %8 = vector.shape_cast %7 : vector<8xf32> to vector<8x1xf32>
    %9 = math.log %8 : vector<8x1xf32>
    %10 = tpu.iota {dimensions = array<i32: 1>} : vector<8x16xi32>
    %11 = vector.broadcast %1 : vector<8x1xi32> to vector<8x16xi32>
    %12 = arith.cmpi eq, %10, %11 : vector<8x16xi32>
    %cst_4 = arith.constant 0.000000e+00 : f32
    %13 = vector.broadcast %cst_4 : f32 to vector<8x16xf32>
    %14 = arith.select %12, %5, %13 : vector<8x16xi1>, vector<8x16xf32>
    %cst_5 = arith.constant dense<0.000000e+00> : vector<8xf32>
    %15 = vector.multi_reduction <add>, %14, %cst_5 [1] : vector<8x16xf32> to vector<8xf32>
    %16 = vector.shape_cast %15 : vector<8xf32> to vector<8x1xf32>
    %17 = arith.subf %9, %16 : vector<8x1xf32>
    %c8_i32 = arith.constant 8 : i32
    %18 = arith.muli %arg0, %c8_i32 : i32
    %19 = tpu.iota {dimensions = array<i32: 0>} : vector<8x1xi32>
    %20 = vector.broadcast %18 : i32 to vector<8x1xi32>
    %21 = arith.addi %20, %19 : vector<8x1xi32>
    %c8_i32_6 = arith.constant 8 : i32
    %22 = vector.broadcast %c8_i32_6 : i32 to vector<8x1xi32>
    %23 = arith.cmpi slt, %21, %22 : vector<8x1xi32>
    %cst_7 = arith.constant 0.000000e+00 : f32
    %24 = vector.broadcast %cst_7 : f32 to vector<8x1xf32>
    %25 = arith.select %23, %17, %24 : vector<8x1xi1>, vector<8x1xf32>
    %26 = vector.shape_cast %25 : vector<8x1xf32> to vector<1x8x1xf32>
    %cst_8 = arith.constant dense<0.000000e+00> : vector<1xf32>
    %27 = vector.multi_reduction <add>, %26, %cst_8 [1, 2] : vector<1x8x1xf32> to vector<1xf32>
    %28 = vector.shape_cast %27 : vector<1xf32> to vector<1x1x1xf32>
    %29 = vector.extract %28[0, 0, 0] : f32 from vector<1x1x1xf32>
    %30 = vector.broadcast %29 : f32 to vector<1x8x128xf32>
    %c0_9 = arith.constant 0 : index
    %c0_10 = arith.constant 0 : index
    %c0_11 = arith.constant 0 : index
    %31 = vector.load %arg3[%c0_9, %c0_10, %c0_11] : memref<1x8x128xf32, #tpu.memory_space<vmem>>, vector<1x8x128xf32>
    tpu.vector_store %arg3[%c0_9, %c0_10, %c0_11], %30 {strides = array<i32>} : memref<1x8x128xf32, #tpu.memory_space<vmem>>, vector<1x8x128xf32>,
    return
  }
  func.func @transform_0(%arg0: i32) -> (i32, i32) {
    %c0_i32 = arith.constant 0 : i32
    %c0_i32_0 = arith.constant 0 : i32
    return %arg0, %c0_i32 : i32, i32
  }
  func.func @transform_1(%arg0: i32) -> (i32, i32) {
    %c0_i32 = arith.constant 0 : i32
    %c0_i32_0 = arith.constant 0 : i32
    return %arg0, %c0_i32 : i32, i32
  }
  func.func @transform_2(%arg0: i32) -> (i32, i32, i32) {
    %c0_i32 = arith.constant 0 : i32
    %c0_i32_0 = arith.constant 0 : i32
    %c0_i32_1 = arith.constant 0 : i32
    return %arg0, %c0_i32, %c0_i32_0 : i32, i32, i32
  }
}

</mosaic_0001>

<bundles_post_ra>
// kernel: tpu_custom_call.1
= control target key start
LH: loop header
LB: loop body
LE: loop exit
PB: predicated region body
PF: predicated region fallthrough
CT: control target
= control target key end

     0   :  { %vm14_vm0 = vcmask 130048   ;;  %s137_s0 = inlined_call_operand.vmem [shape: s32[8,1], index: 0, kind: input, shape index: {}]   ;;  %s138_s1 = inlined_call_operand.vmem [shape: f32[8,16], index: 1, kind: input, shape index: {}]   ;;  %s139_s2 = inlined_call_operand.hbm [shape: f32[1,8,128], index: 2, kind: output, shape index: {}]  }
   0x1   :  { %v12_v0 = vld [vmem:[%s138_s1] sm:$0xff] }
   0x2   :  { %7 = vsyncpa [#allocation3], 0  ;;  %v15_v1 = vsel %vm14_vm0, %v12_v0, -inf  ;;  %v108_v2 = vmov 0   ;;  %v13_v3 = vld [vmem:[%s137_s0] sm:$0xff]  ;;  %v26_v9 = vlaneseq  ;;  %vm44_vm2 = vcmask 7168  }
   0x3   :  { %77 = vset.pattern.permute.xlu0 %v108_v2  ;;  %s109_s0 = smov [#allocation2]   ;;  %s64_s15 = sshll.u32 %s139_s2, 4  ;;  %s65_s15 = int_to_ptr.hbm [resolvable:$true] %s64_s15 }
   0x4   :  { %16 = vmax.xlane.f32.xlu0 %v15_v1  ;;  %v27_v10 = vand.u32 127, %v26_v9  ;;  %s62_s1 = sshll.u32 %s109_s0, 4  ;;  %s63_s1 = int_to_ptr.vmem [resolvable:$true] %s62_s1 }
  0x18   :  { %29 = vperm.xlu0 %77, %v13_v3  }
  0x77   :  { %v17_v4 = vpop.xlane.xlu0 %16 }
  0x78   :  { %v18_v5 = vsub.f32 %v12_v0, %v17_v4 }
  0x7a   :  { %v19_v6 = vmul.f32 1.442695, %v18_v5 }
  0x7c   :  { %78 = vpow2.f32 %v19_v6 }
  0x82   :  { %v79_v7 = vpop.eup %78 }
  0x83   :  { %v21_v8 = vsel %vm14_vm0, %v79_v7, 0.0 }
  0x84   :  { %22 = vadd.xlane.f32.xlu1 %v21_v8 }
  0x8a   :  { %v30_v11 = vpop.permute.xlu0 %29 }
  0x8b   :  { %vm31_vm1 = vcmp.eq.s32.totalorder %v27_v10, %v30_v11 }
  0x8c   :  { %v32_v12 = vsel %vm31_vm1, %v18_v5, 0.0 }
  0x8d   :  { %v33_v13 = vsel %vm14_vm0, %v32_v12, 0.0 }
  0x8e   :  { %34 = vadd.xlane.f32.xlu1 %v33_v13 }
  0xf7   :  { %v23_v14 = vpop.xlane.xlu1 %22 }
  0xf8   :  { %80 = vlog2.f32 %v23_v14 }
  0xfe   :  { %v81_v15 = vpop.eup %80 }
  0xff   :  { %v25_v16 = vmul.f32 0.6931472, %v81_v15 }
 0x101   :  { %v35_v17 = vpop.xlane.xlu1 %34 }
 0x102   :  { %v36_v18 = vsub.f32 %v25_v16, %v35_v17 }
 0x104   :  { %v45_v19 = vsel %vm44_vm2, %v36_v18, 0.0 }
 0x105   :  { %46 = vadd.xlane.f32.xlu2 %v45_v19 }
 0x178   :  { %v47_v20 = vpop.xlane.xlu2 %46 }
 0x179   :  { %v48_v21 = vrot.slane %v47_v20, 4 }
 0x17b   :  { %v49_v22 = vadd.f32 %v48_v21, %v47_v20 }
 0x17d   :  { %v50_v23 = vrot.slane %v49_v22, 2 }
 0x17f   :  { %v51_v24 = vadd.f32 %v50_v23, %v49_v22 }
 0x181   :  { %v52_v25 = vrot.slane %v51_v24, 1 }
 0x183   :  { %v53_v26 = vadd.f32 %v52_v25, %v51_v24 }
 0x185   :  { %73 = vpush %v53_v26 }
 0x1b6   :  { %s74_s16 = spop %73 }
 0x1b7   :  { %v55_v27 = vstv %s74_s16 }
 0x1b8   :  { %56 = vst [vmem:[#allocation2] sm:$0xff] %v55_v27 }
 0x1b9   :  { %67 = dma.vmem_to_hbm [thread:$0]  %s63_s1, 128, %s65_s15, [#allocation3]  }
 0x1ba   :  { %106 = dma.done.wait [#allocation3], 128  }
 0x1bb   :  { %107 = vsyncadd [#allocation3], 4294967168 }
 0x1bc   :  { %72 = vsyncpa [#allocation3], 1 }

</bundles_post_ra>
